<compile_context>
chip_gen: v7x
topology: tpu7x:2x2x1
jax: 0.10.0
libtpu: 0.0.40
codegen_flags: <defaults>
</compile_context>

<pallas_src>
import math
import jax
import jax.numpy as jnp
from jax.experimental import pallas as pl
from jax.experimental.pallas import tpu as pltpu

_LANES = 128     # vreg lane width: the rank-E bottleneck dim is padded to this.
_SUBLANES = 8    # vreg sublane count: row tiles are kept 8-aligned.


# --------------------------------------------------------------------------- #
# Kernel                                                                      #
# --------------------------------------------------------------------------- #
def _factored_affine_kernel(x_ref, wa_ref, ba_ref, wb_ref, bb_ref, out_ref, h_ref):
    """y = (x @ W_a + b_a) @ W_b + b_b.

    The (TS, Ep) intermediate is held in a VMEM scratch (h_ref) and never
    written to HBM.  The PyTorch forward never applies the constructed ReLUs,
    so no activation appears here; if ReLUs are ever re-enabled upstream they
    belong between the two dots (and the per-half folds must be un-fused).
    """
    x = x_ref[...].astype(wa_ref.dtype)
    h_ref[...] = (
        jnp.dot(x, wa_ref[...], preferred_element_type=jnp.float32) + ba_ref[...]
    )
    h = h_ref[...].astype(wb_ref.dtype)
    out_ref[...] = (
        jnp.dot(h, wb_ref[...], preferred_element_type=jnp.float32) + bb_ref[...]
    ).astype(out_ref.dtype)


# --------------------------------------------------------------------------- #
# Parameter folding (call once, outside the per-step forward)                 #
# --------------------------------------------------------------------------- #
def fold_params(params, weight_dtype=jnp.float32):
    """Fold the 4 chained Linear layers (PyTorch (out, in) layout) into the
    rank-E factorization

        W_a = W1^T @ W2^T  (F, E)    b_a = b1 @ W2^T + b2   (E,)
        W_b = W3^T @ W4^T  (E, F)    b_b = b3 @ W4^T + b4   (F,)

    and zero-pad the bottleneck dim E up to a lane multiple Ep.  Folding is
    done in f32; the weight factors are cast to `weight_dtype` afterwards
    (biases stay f32 so they add into the f32 MXU accumulator).  Exact only
    because forward() never applies the constructed ReLUs."""
    (w1, b1), (w2, b2), (w3, b3), (w4, b4) = (
        params["enc_L1"], params["enc_L2"], params["dec_L1"], params["dec_L2"])

    w1, b1, w2, b2, w3, b3, w4, b4 = (a.astype(jnp.float32)
                                      for a in (w1, b1, w2, b2, w3, b3, w4, b4))

    w_a = w1.T @ w2.T                    # (F, E)
    b_a = b1 @ w2.T + b2                 # (E,)
    w_b = w3.T @ w4.T                    # (E, F)
    b_b = b3 @ w4.T + b4                 # (F,)

    n_features, emb = w_a.shape
    ep = pl.cdiv(emb, _LANES) * _LANES

    wa_p = jnp.zeros((n_features, ep), jnp.float32).at[:, :emb].set(w_a)
    ba_p = jnp.zeros((1, ep), jnp.float32).at[:, :emb].set(b_a)
    wb_p = jnp.zeros((ep, n_features), jnp.float32).at[:emb, :].set(w_b)
    bb_p = b_b.reshape(1, n_features)

    return (wa_p.astype(weight_dtype), ba_p,            # biases stay f32
            wb_p.astype(weight_dtype), bb_p)


# --------------------------------------------------------------------------- #
# Sizing heuristics                                                           #
# --------------------------------------------------------------------------- #
def _vmem_limit_bytes():
    """~75% of physical VMEM: ~48 MiB on v7x (64 MiB), 96 MiB on v5e/v6e
    (128 MiB).  Falls back to the always-safe 32 MiB scoped default."""
    try:
        cap = int(pltpu.get_tpu_info().vmem_capacity_bytes)
        return min(96 * 1024 * 1024, (cap * 3) // 4)
    except Exception:
        return 32 * 1024 * 1024


def _max_tile_rows(vmem_limit):
    # 1024-row tiles (~86% of HBM roofline) on v5e/v6e; stay at 512 on v7x.
    return 1024 if vmem_limit >= 64 * 1024 * 1024 else 512


def _choose_tile_rows(s, max_rows):
    ts = min(s, max_rows)
    # v7x megacore: prefer >=2 grid steps along the "parallel" axis whenever
    # the rows can be split into 8-aligned halves (no-op for the tiny demo).
    if ts == s and s >= 2 * _SUBLANES:
        ts = ((s + 1) // 2 + _SUBLANES - 1) // _SUBLANES * _SUBLANES
    return ts


# --------------------------------------------------------------------------- #
# Forward wrapper                                                             #
# --------------------------------------------------------------------------- #
def recurrent_autoencoder_forward(x, folded):
    """x: (seq_len, n_features).  folded: (W_a, b_a, W_b, b_b) from fold_params."""
    wa, ba, wb, bb = folded
    s, f = x.shape
    ep = wa.shape[1]

    vmem_limit = _vmem_limit_bytes()
    ts = _choose_tile_rows(s, _max_tile_rows(vmem_limit))
    grid = (pl.cdiv(s, ts),)

    # Rough resident-VMEM estimate: single-buffered weights/biases,
    # double-buffered x/out tiles, plus the f32 intermediate scratch.
    weight_bytes = (wa.size * wa.dtype.itemsize + wb.size * wb.dtype.itemsize
                    + ba.size * ba.dtype.itemsize + bb.size * bb.dtype.itemsize)
    tile_bytes = 2 * 2 * ts * f * x.dtype.itemsize + ts * ep * 4
    if weight_bytes + tile_bytes > vmem_limit:
        raise ValueError(
            f"Estimated VMEM residency {weight_bytes + tile_bytes} B exceeds "
            f"vmem_limit_bytes={vmem_limit}; reduce n_features/embedding_dim "
            "or add a second grid axis over the feature dim.")

    return pl.pallas_call(
        _factored_affine_kernel,
        out_shape=jax.ShapeDtypeStruct((s, f), x.dtype),
        grid=grid,
        in_specs=[
            # streamed row tiles (double-buffered by default)
            pl.BlockSpec((ts, f), lambda i: (i, 0)),
            # grid-invariant operands: single-buffered, VMEM-resident
            pl.BlockSpec((f, ep), lambda i: (0, 0), pipeline_mode=pl.Buffered(1)),
            pl.BlockSpec((1, ep), lambda i: (0, 0), pipeline_mode=pl.Buffered(1)),
            pl.BlockSpec((ep, f), lambda i: (0, 0), pipeline_mode=pl.Buffered(1)),
            pl.BlockSpec((1, f), lambda i: (0, 0), pipeline_mode=pl.Buffered(1)),
        ],
        # Output written at the real feature width -> no post-call de-padding pass.
        out_specs=pl.BlockSpec((ts, f), lambda i: (i, 0)),
        scratch_shapes=[pltpu.VMEM((ts, ep), jnp.float32)],   # (TS, Ep) intermediate
        compiler_params=pltpu.CompilerParams(
            dimension_semantics=("parallel",),
            vmem_limit_bytes=vmem_limit,
        ),
        cost_estimate=pl.CostEstimate(
            flops=4 * s * f * ep + s * (ep + f),
            transcendentals=0,
            bytes_accessed=int(2 * s * f * x.dtype.itemsize + weight_bytes),
        ),
    )(x, wa, ba, wb, bb)


# --------------------------------------------------------------------------- #
# Init + reference (chained-layer math, mirrors the PyTorch forward)          #
# --------------------------------------------------------------------------- #
def _init_linear(key, out_features, in_features):
    """PyTorch nn.Linear default init: U(-1/sqrt(fan_in), 1/sqrt(fan_in))."""
    kw, kb = jax.random.split(key)
    bound = 1.0 / math.sqrt(in_features)
    w = jax.random.uniform(kw, (out_features, in_features),
                           minval=-bound, maxval=bound, dtype=jnp.float32)
    b = jax.random.uniform(kb, (out_features,),
                           minval=-bound, maxval=bound, dtype=jnp.float32)
    return w, b


def init_params(key, n_features, embedding_dim):
    hidden = 2 * embedding_dim
    k1, k2, k3, k4 = jax.random.split(key, 4)
    return {
        "enc_L1": _init_linear(k1, hidden, n_features),      # (2E, F), (2E,)
        "enc_L2": _init_linear(k2, embedding_dim, hidden),    # (E, 2E), (E,)
        "dec_L1": _init_linear(k3, hidden, embedding_dim),    # (2E, E), (2E,)
        "dec_L2": _init_linear(k4, n_features, hidden),       # (F, 2E), (F,)
    }


def reference_forward(x, params):
    """Pure-JAX reference with the original chained structure (no ReLU,
    matching the PyTorch forward)."""
    (w1, b1), (w2, b2), (w3, b3), (w4, b4) = (
        params["enc_L1"], params["enc_L2"], params["dec_L1"], params["dec_L2"])
    h = x @ w1.T + b1
    z = h @ w2.T + b2
    d = z @ w3.T + b3
    y = d @ w4.T + b4
    return y


if __name__ == "__main__":
    seq_len = 8
    n_features = 4
    embedding_dim = 32

    key = jax.random.PRNGKey(0)
    k_x, k_p = jax.random.split(key)

    x = jax.random.normal(k_x, (seq_len, n_features), dtype=jnp.float32)
    params = init_params(k_p, n_features, embedding_dim)
    y_ref = reference_forward(x, params)

    # f32 weight path: matches the chained reference up to reassociation.
    folded_f32 = fold_params(params, weight_dtype=jnp.float32)
    y32 = jax.block_until_ready(recurrent_autoencoder_forward(x, folded_f32))
    assert y32.shape == (seq_len, n_features)
    assert jnp.allclose(y32, y_ref, atol=1e-4, rtol=1e-4), "f32 mismatch vs reference"

    # bf16 weight path (v6e/v7x MXU fast path, f32 accumulation): looser tolerance.
    folded_bf16 = fold_params(params, weight_dtype=jnp.bfloat16)
    y16 = jax.block_until_ready(recurrent_autoencoder_forward(x, folded_bf16))
    assert y16.shape == (seq_len, n_features)
    assert jnp.allclose(y16, y_ref, atol=5e-2, rtol=5e-2), "bf16 mismatch vs reference"

    print("KERNEL_OK")
</pallas_src>

<mosaic_0001>
module attributes {stable_mosaic.version = 11 : i64} {
  func.func @_factored_affine_kernel(%arg0: i32, %arg1: memref<8x4xf32, #tpu.memory_space<vmem>>, %arg2: memref<4x128xf32, #tpu.memory_space<vmem>>, %arg3: memref<1x128xf32, #tpu.memory_space<vmem>>, %arg4: memref<128x4xf32, #tpu.memory_space<vmem>>, %arg5: memref<1x4xf32, #tpu.memory_space<vmem>>, %arg6: memref<8x4xf32, #tpu.memory_space<vmem>>, %arg7: memref<8x128xf32, #tpu.memory_space<vmem>>) attributes {dimension_semantics = [#tpu.dimension_semantics<parallel>], iteration_bounds = array<i64: 1>, scalar_prefetch = 0 : i64, scratch_operands = 1 : i64, tpu.core_type = #tpu.core_type<tc>, window_params = [{transform_indices = @transform_0, window_bounds = array<i64: 8, 4>}, {pipeline_mode = #tpu.pipeline_mode<synchronous>, transform_indices = @transform_1, window_bounds = array<i64: 4, 128>}, {pipeline_mode = #tpu.pipeline_mode<synchronous>, transform_indices = @transform_2, window_bounds = array<i64: 1, 128>}, {pipeline_mode = #tpu.pipeline_mode<synchronous>, transform_indices = @transform_3, window_bounds = array<i64: 128, 4>}, {pipeline_mode = #tpu.pipeline_mode<synchronous>, transform_indices = @transform_4, window_bounds = array<i64: 1, 4>}, {transform_indices = @transform_5, window_bounds = array<i64: 8, 4>}]} {
    %c0 = arith.constant 0 : index
    %c0_0 = arith.constant 0 : index
    %0 = vector.load %arg1[%c0, %c0_0] : memref<8x4xf32, #tpu.memory_space<vmem>>, vector<8x4xf32>
    %c0_1 = arith.constant 0 : index
    %c0_2 = arith.constant 0 : index
    %1 = vector.load %arg2[%c0_1, %c0_2] : memref<4x128xf32, #tpu.memory_space<vmem>>, vector<4x128xf32>
    %cst = arith.constant dense<0.000000e+00> : vector<8x128xf32>
    %2 = tpu.matmul %0, %1, %cst {dimension_numbers = #tpu.dot_dimension_numbers<[1], [0], [0], [1], [0, 0, 1, 1], [], []>} : vector<8x4xf32>, vector<4x128xf32>, vector<8x128xf32> -> vector<8x128xf32>
    %c0_3 = arith.constant 0 : index
    %c0_4 = arith.constant 0 : index
    %3 = vector.load %arg3[%c0_3, %c0_4] : memref<1x128xf32, #tpu.memory_space<vmem>>, vector<1x128xf32>
    %4 = vector.broadcast %3 : vector<1x128xf32> to vector<8x128xf32>
    %5 = arith.addf %2, %4 : vector<8x128xf32>
    %c0_5 = arith.constant 0 : index
    %c0_6 = arith.constant 0 : index
    %6 = vector.load %arg7[%c0_5, %c0_6] : memref<8x128xf32, #tpu.memory_space<vmem>>, vector<8x128xf32>
    tpu.vector_store %arg7[%c0_5, %c0_6], %5 {strides = array<i32>} : memref<8x128xf32, #tpu.memory_space<vmem>>, vector<8x128xf32>,
    %c0_7 = arith.constant 0 : index
    %c0_8 = arith.constant 0 : index
    %7 = vector.load %arg7[%c0_7, %c0_8] : memref<8x128xf32, #tpu.memory_space<vmem>>, vector<8x128xf32>
    %c0_9 = arith.constant 0 : index
    %c0_10 = arith.constant 0 : index
    %8 = vector.load %arg4[%c0_9, %c0_10] : memref<128x4xf32, #tpu.memory_space<vmem>>, vector<128x4xf32>
    %cst_11 = arith.constant dense<0.000000e+00> : vector<8x4xf32>
    %9 = tpu.matmul %7, %8, %cst_11 {dimension_numbers = #tpu.dot_dimension_numbers<[1], [0], [0], [1], [0, 0, 1, 1], [], []>} : vector<8x128xf32>, vector<128x4xf32>, vector<8x4xf32> -> vector<8x4xf32>
    %c0_12 = arith.constant 0 : index
    %c0_13 = arith.constant 0 : index
    %10 = vector.load %arg5[%c0_12, %c0_13] : memref<1x4xf32, #tpu.memory_space<vmem>>, vector<1x4xf32>
    %11 = vector.broadcast %10 : vector<1x4xf32> to vector<8x4xf32>
    %12 = arith.addf %9, %11 : vector<8x4xf32>
    %c0_14 = arith.constant 0 : index
    %c0_15 = arith.constant 0 : index
    %13 = vector.load %arg6[%c0_14, %c0_15] : memref<8x4xf32, #tpu.memory_space<vmem>>, vector<8x4xf32>
    tpu.vector_store %arg6[%c0_14, %c0_15], %12 {strides = array<i32>} : memref<8x4xf32, #tpu.memory_space<vmem>>, vector<8x4xf32>,
    return
  }
  func.func @transform_0(%arg0: i32) -> (i32, i32) {
    %c0_i32 = arith.constant 0 : i32
    %c0_i32_0 = arith.constant 0 : i32
    return %arg0, %c0_i32 : i32, i32
  }
  func.func @transform_1(%arg0: i32) -> (i32, i32) {
    %c0_i32 = arith.constant 0 : i32
    %c0_i32_0 = arith.constant 0 : i32
    %c0_i32_1 = arith.constant 0 : i32
    return %c0_i32, %c0_i32_0 : i32, i32
  }
  func.func @transform_2(%arg0: i32) -> (i32, i32) {
    %c0_i32 = arith.constant 0 : i32
    %c0_i32_0 = arith.constant 0 : i32
    %c0_i32_1 = arith.constant 0 : i32
    return %c0_i32, %c0_i32_0 : i32, i32
  }
  func.func @transform_3(%arg0: i32) -> (i32, i32) {
    %c0_i32 = arith.constant 0 : i32
    %c0_i32_0 = arith.constant 0 : i32
    %c0_i32_1 = arith.constant 0 : i32
    return %c0_i32, %c0_i32_0 : i32, i32
  }
  func.func @transform_4(%arg0: i32) -> (i32, i32) {
    %c0_i32 = arith.constant 0 : i32
    %c0_i32_0 = arith.constant 0 : i32
    %c0_i32_1 = arith.constant 0 : i32
    return %c0_i32, %c0_i32_0 : i32, i32
  }
  func.func @transform_5(%arg0: i32) -> (i32, i32) {
    %c0_i32 = arith.constant 0 : i32
    %c0_i32_0 = arith.constant 0 : i32
    return %arg0, %c0_i32 : i32, i32
  }
}

</mosaic_0001>

<bundles_post_ra>
// kernel: tpu_custom_call.1
= control target key start
LH: loop header
LB: loop body
LE: loop exit
PB: predicated region body
PF: predicated region fallthrough
CT: control target
= control target key end

     0   :  { %vm33_vm0 = vcmask 1043456   ;;  %vm29_vm1 = vcmask 31744   ;;  %v297_v0 = vmov 0.0   ;;  %vm298_vm2 = vmmov 0   ;;  %s395_s1 = inlined_call_operand.vmem [shape: f32[4,128], index: 1, kind: input, shape index: {}]   ;;  %s396_s0 = inlined_call_operand.vmem [shape: f32[8,4], index: 0, kind: input, shape index: {}]   ;;  %s397_s3 = inlined_call_operand.vmem [shape: f32[128,4], index: 3, kind: input, shape index: {}]   ;;  %s398_s2 = inlined_call_operand.vmem [shape: f32[1,128], index: 2, kind: input, shape index: {}]   ;;  %s399_s4 = inlined_call_operand.vmem [shape: f32[1,4], index: 4, kind: input, shape index: {}]   ;;  %s400_s5 = inlined_call_operand.vmem [shape: f32[8,4], index: 5, kind: output, shape index: {}]  }
   0x1   :  { %230 = vmatprep.subr.mxu0 %v297_v0  ;;  %v21_v1 = vld [vmem:[%s395_s1] sm:$0xf]  ;;  %232 = vmatprep.mubr.msk.f32.mxu0 %vm298_vm2, %v297_v0  ;;  %v299_v4 = vmov 0.0|0.0   ;;  %v110_v5 = vld [vmem:[%s397_s3 + $0x8] sm:$0xff]  ;;  %v111_v6 = vld [vmem:[%s397_s3 + $0x10] sm:$0xff] }
   0x2   :  { %v20_v2 = vld [vmem:[%s396_s0] sm:$0xff]  ;;  %231 = vmatpush3.msk.msra.mxu0 %vm33_vm0, %v21_v1  ;;  %270 = vmatprep.subr.bf16.mxu1 %v299_v4  ;;  %v112_v7 = vld [vmem:[%s397_s3 + $0x18] sm:$0xff]  ;;  %v114_v11 = vld [vmem:[%s397_s3 + $0x28] sm:$0xff] }
   0x3   :  { %v109_v3 = vld [vmem:[%s397_s3] sm:$0xff]  ;;  %233 = vmatmul.mubr.msk.f32.vlgmr.msra.gmra.mrb[0].mxu0 %vm29_vm1, %v20_v2  ;;  %267 = vmatprep.mubr.msk.f32.mxu1 %vm298_vm2, %v297_v0  ;;  %v274_v9 = vpack.c.bf16 %v112_v7, %v111_v6  ;;  %v115_v13 = vld [vmem:[%s397_s3 + $0x30] sm:$0xff]  ;;  %v116_v14 = vld [vmem:[%s397_s3 + $0x38] sm:$0xff] }
   0x4   :  { %v271_v8 = vpack.c.bf16 %v110_v5, %v109_v3  ;;  %v113_v10 = vld [vmem:[%s397_s3 + $0x20] sm:$0xff]  ;;  %v280_v15 = vpack.c.bf16 %v116_v14, %v115_v13  ;;  %v118_v17 = vld [vmem:[%s397_s3 + $0x48] sm:$0xff]  ;;  %v119_v19 = vld [vmem:[%s397_s3 + $0x50] sm:$0xff] }
   0x5   :  { %v277_v12 = vpack.c.bf16 %v114_v11, %v113_v10  ;;  %v117_v16 = vld [vmem:[%s397_s3 + $0x40] sm:$0xff]  ;;  %v120_v20 = vld [vmem:[%s397_s3 + $0x58] sm:$0xff]  ;;  %v122_v23 = vld [vmem:[%s397_s3 + $0x68] sm:$0xff] }
   0x6   :  { %272 = vmatpush3.bf16.msra.mxu1 %v271_v8  ;;  %v283_v18 = vpack.c.bf16 %v118_v17, %v117_v16  ;;  %v286_v21 = vpack.c.bf16 %v120_v20, %v119_v19  ;;  %v121_v22 = vld [vmem:[%s397_s3 + $0x60] sm:$0xff]  ;;  %v123_v25 = vld [vmem:[%s397_s3 + $0x70] sm:$0xff]  ;;  %v124_v26 = vld [vmem:[%s397_s3 + $0x78] sm:$0xff] }
   0x7   :  { %273 = vmatprep.subr.bf16.mxu1 %v299_v4  ;;  %v289_v24 = vpack.c.bf16 %v122_v23, %v121_v22  ;;  %v292_v27 = vpack.c.bf16 %v124_v26, %v123_v25  ;;  %v207_v28 = vld [vmem:[%s398_s2] ss:$0 sm:$0xff] }
   0x8   :  { %v210_v32 = vld [vmem:[%s399_s4] ss:$0 sm:$0xff] }
   0xa   :  { %275 = vmatpush3.bf16.msra.mxu1 %v274_v9 }
   0xb   :  { %276 = vmatprep.subr.bf16.mxu1 %v299_v4 }
   0xe   :  { %278 = vmatpush3.bf16.msra.mxu1 %v277_v12 }
   0xf   :  { %279 = vmatprep.subr.bf16.mxu1 %v299_v4 }
  0x12   :  { %281 = vmatpush3.bf16.msra.mxu1 %v280_v15 }
  0x13   :  { %282 = vmatprep.subr.bf16.mxu1 %v299_v4 }
  0x16   :  { %284 = vmatpush3.bf16.msra.mxu1 %v283_v18 }
  0x17   :  { %285 = vmatprep.subr.bf16.mxu1 %v299_v4 }
  0x1a   :  { %287 = vmatpush3.bf16.msra.mxu1 %v286_v21 }
  0x1b   :  { %288 = vmatprep.subr.bf16.mxu1 %v299_v4 }
  0x1e   :  { %290 = vmatpush3.bf16.msra.mxu1 %v289_v24 }
  0x1f   :  { %291 = vmatprep.subr.bf16.mxu1 %v299_v4 }
  0x22   :  { %293 = vmatpush3.bf16.msra.mxu1 %v292_v27 }
  0xd6   :  { %v103_v29 = vpop.f32.mrb[0].mxu0 }
  0xd7   :  { %v104_v30 = vadd.f32 %v207_v28, %v103_v29  ;;  %v234_v31 = vpop.f32.mrb[1].mxu0 }
  0xd9   :  { %268 = vmatmul.mubr.f32.vlgmr.msra.gmra.mrb[0].mxu1 %v104_v30 }
 0x1ac   :  { %v198_v33 = vpop.f32.mrb[0].mxu1 }
 0x1ad   :  { %v199_v34 = vadd.f32 %v210_v32, %v198_v33  ;;  %v269_v35 = vpop.f32.mrb[1].mxu1 }
 0x1af   :  { %202 = vst.msk [vmem:[%s400_s5] sm:$0xff] %vm29_vm1, %v199_v34 }

</bundles_post_ra>
